<compile_context>
chip_gen: v6e
topology: v6e:2x2x1
jax: 0.10.0
libtpu: 0.0.40
codegen_flags: <defaults>
</compile_context>

<pallas_src>
import jax
import jax.numpy as jnp
from jax.experimental import pallas as pl
from jax.experimental.pallas import tpu as pltpu

_LANE = 128
# ~4 MiB per block; with input+output double buffering (4 buffers) this stays
# around 16 MiB of scoped VMEM -> safe on v5e/v6e/v7x.
_TARGET_BLOCK_BYTES = 4 * 1024 * 1024


def _identity_kernel(x_ref, o_ref):
    # Pure copy: load the whole VMEM tile and store it to the output tile.
    o_ref[...] = x_ref[...]


def _sublane_multiple(dtype) -> int:
    # Minimum second-minor tile multiple: f32 -> 8, bf16/f16 -> 16, int8 -> 32.
    itemsize = jnp.dtype(dtype).itemsize
    return max(8, 32 // max(itemsize, 1))


def identity(x):
    """Identity forward: returns a tensor equal to x (same shape & dtype)."""
    orig_shape = x.shape
    dtype = x.dtype
    n = x.size
    if n == 0:
        return x

    itemsize = jnp.dtype(dtype).itemsize
    flat = x.reshape(-1)

    # Widest lane-dense last dim (multiple of 128) that divides n exactly.
    width = 0
    for cand in (4096, 2048, 1024, 512, 256, 128):
        if n % cand == 0:
            width = cand
            break

    if width == 0:
        # n not a multiple of 128: copy the whole (1, n) array as a single
        # full-array block — no pad/slice copies in the wrapper.
        # TODO(synk): very large non-128-divisible inputs would need a tiled
        # path with a masked tail block; fine for typical activation shapes.
        x2d = flat.reshape(1, n)
        out2d = pl.pallas_call(
            _identity_kernel,
            out_shape=jax.ShapeDtypeStruct((1, n), dtype),
        )(x2d)
        return out2d.reshape(orig_shape)

    rows = n // width
    x2d = flat.reshape(rows, width)

    sub = _sublane_multiple(dtype)
    target_rows = max(sub, _TARGET_BLOCK_BYTES // (width * itemsize))
    target_rows = (target_rows // sub) * sub  # keep a legal sublane multiple

    if rows <= target_rows:
        block_rows = rows  # full row extent is always a legal block dim
    else:
        block_rows = target_rows

    grid = (pl.cdiv(rows, block_rows),)  # Pallas masks the partial last block

    out2d = pl.pallas_call(
        _identity_kernel,
        out_shape=jax.ShapeDtypeStruct((rows, width), dtype),
        grid_spec=pltpu.PrefetchScalarGridSpec(
            num_scalar_prefetch=0,
            grid=grid,
            in_specs=[pl.BlockSpec((block_rows, width), lambda i: (i, 0))],
            out_specs=pl.BlockSpec((block_rows, width), lambda i: (i, 0)),
        ),
        compiler_params=pltpu.CompilerParams(
            dimension_semantics=("parallel",),
            vmem_limit_bytes=32 * 1024 * 1024,
        ),
        cost_estimate=pl.CostEstimate(
            flops=0, transcendentals=0, bytes_accessed=2 * n * itemsize
        ),
    )(x2d)

    return out2d.reshape(orig_shape)


if __name__ == "__main__":
    key = jax.random.PRNGKey(0)

    # NCHW, small shapes: batch=2, channels=4, spatial=16x16 (f32).
    x = jax.random.normal(key, (2, 4, 16, 16), dtype=jnp.float32)
    y = identity(x)
    jax.block_until_ready(y)
    assert y.shape == x.shape, (y.shape, x.shape)
    assert y.dtype == x.dtype, (y.dtype, x.dtype)
    assert bool(jnp.all(y == x)), "Identity kernel output mismatch (f32)"

    # Sub-32-bit dtype sanity check (exercises dtype-aware tiling path).
    xb = jax.random.normal(key, (2, 4, 16, 16), dtype=jnp.bfloat16)
    yb = identity(xb)
    jax.block_until_ready(yb)
    assert yb.shape == xb.shape and yb.dtype == xb.dtype
    assert bool(jnp.all(yb == xb)), "Identity kernel output mismatch (bf16)"

    print("KERNEL_OK")
</pallas_src>

<mosaic_0001>
module attributes {stable_mosaic.version = 11 : i64} {
  func.func @_identity_kernel(%arg0: i32, %arg1: memref<1x2048xf32, #tpu.memory_space<vmem>>, %arg2: memref<1x2048xf32, #tpu.memory_space<vmem>>) attributes {dimension_semantics = [#tpu.dimension_semantics<parallel>], iteration_bounds = array<i64: 1>, scalar_prefetch = 0 : i64, scratch_operands = 0 : i64, tpu.core_type = #tpu.core_type<tc>, window_params = [{transform_indices = @transform_0, window_bounds = array<i64: 1, 2048>}, {transform_indices = @transform_1, window_bounds = array<i64: 1, 2048>}]} {
    %c0 = arith.constant 0 : index
    %c0_0 = arith.constant 0 : index
    %0 = vector.load %arg1[%c0, %c0_0] : memref<1x2048xf32, #tpu.memory_space<vmem>>, vector<1x2048xf32>
    %c0_1 = arith.constant 0 : index
    %c0_2 = arith.constant 0 : index
    %1 = vector.load %arg2[%c0_1, %c0_2] : memref<1x2048xf32, #tpu.memory_space<vmem>>, vector<1x2048xf32>
    tpu.vector_store %arg2[%c0_1, %c0_2], %0 {strides = array<i32>} : memref<1x2048xf32, #tpu.memory_space<vmem>>, vector<1x2048xf32>,
    return
  }
  func.func @transform_0(%arg0: i32) -> (i32, i32) {
    %c0_i32 = arith.constant 0 : i32
    %c0_i32_0 = arith.constant 0 : i32
    return %arg0, %c0_i32 : i32, i32
  }
  func.func @transform_1(%arg0: i32) -> (i32, i32) {
    %c0_i32 = arith.constant 0 : i32
    %c0_i32_0 = arith.constant 0 : i32
    return %arg0, %c0_i32 : i32, i32
  }
}

</mosaic_0001>

<bundles_post_ra>
// kernel: tpu_custom_call.1
= control target key start
LH: loop header
LB: loop body
LE: loop exit
PB: predicated region body
PF: predicated region fallthrough
CT: control target
= control target key end

     0   :  { %6 = vsyncpa [#allocation3], 0  ;;  %s104_s0 = inlined_call_operand.hbm [shape: f32[1,2048], index: 0, kind: input, shape index: {}]   ;;  %s105_s1 = inlined_call_operand.hbm [shape: f32[1,2048], index: 1, kind: output, shape index: {}]  }
   0x1   :  { %7 = vsyncpa [#allocation4], 0  ;;  %s86_s6 = smov [#allocation2]  }
   0x2   :  { %s14_s7 = sshll.u32 %s86_s6, 4  ;;  %s15_s7 = int_to_ptr.vmem [resolvable:$true] %s14_s7 }
   0x3   :  { %s50_s8 = scalar_lea.vmem %s15_s7, 256  ;;  %p55_p1 = scmp.lt.s32.totalorder %s15_s7, %s15_s7 }
   0x4   :  { %p51_p0 = scmp.ne.s32.totalorder %s15_s7, %s50_s8  ;;  %p56_p2 = scmp.lt.s32.totalorder %s50_s8, %s50_s8 }
   0x6   :  { %p57_p3 = por %p56_p2, %p55_p1 }
   0x8   :  { %p58_p4 = pnand %p57_p3, %p51_p0 }
   0xa   :  { %61 = shalt.err (!%p58_p4)
}
   0xb   :  { %17 = dma.hbm_to_vmem [thread:$0]  %s104_s0, 256, %s15_s7, [#allocation3]  }
   0xc   :  { %82 = dma.done.wait [#allocation3], 256  }
   0xd   :  { %83 = vsyncadd [#allocation3], 4294967040  ;;  %s87_s11 = smov [#allocation5]   ;;  %v21_v0 = vld [vmem:[#allocation2] sm:$0xff]  ;;  %v22_v1 = vld [vmem:[#allocation2 + $0x8] sm:$0xff] }
   0xe   :  { %s31_s12 = sshll.u32 %s87_s11, 4  ;;  %23 = vst [vmem:[#allocation5] sm:$0xff] %v21_v0  ;;  %24 = vst [vmem:[#allocation5 + $0x8] sm:$0xff] %v22_v1  ;;  %s32_s12 = int_to_ptr.vmem [resolvable:$true] %s31_s12 }
   0xf   :  { %s62_s13 = scalar_lea.vmem %s32_s12, 256  ;;  %p67_p6 = scmp.lt.s32.totalorder %s32_s12, %s32_s12 }
  0x10   :  { %p63_p5 = scmp.ne.s32.totalorder %s32_s12, %s62_s13  ;;  %p68_p7 = scmp.lt.s32.totalorder %s62_s13, %s62_s13 }
  0x12   :  { %p69_p8 = por %p68_p7, %p67_p6 }
  0x14   :  { %p70_p9 = pnand %p69_p8, %p63_p5 }
  0x16   :  { %73 = shalt.err (!%p70_p9)
}
  0x17   :  { %34 = dma.vmem_to_hbm [thread:$0]  %s32_s12, 256, %s105_s1, [#allocation4]  }
  0x18   :  { %84 = dma.done.wait [#allocation4], 256  }
  0x19   :  { %85 = vsyncadd [#allocation4], 4294967040 }
  0x1a   :  { %38 = vsyncpa [#allocation3], 1 }
  0x1b   :  { %39 = vsyncpa [#allocation4], 1 }

</bundles_post_ra>
